<compile_context>
chip_gen: v7x
topology: tpu7x:2x2x1
jax: 0.10.0
libtpu: 0.0.40
codegen_flags: <defaults>
</compile_context>

<pallas_src>
import jax
import jax.numpy as jnp
from jax import lax
from jax.experimental import pallas as pl
from jax.experimental.pallas import tpu as pltpu

NEG_SLOPE = 0.2     # DGL GATConv default negative_slope
NUM_LAYERS = 3


def fused_gat_kernel(adj_ref, x_ref, w_ref, al_ref, ar_ref, b_ref, out_ref):
    # adj_ref: (N, N)  int8, adj[dst, src] (1 = edge src->dst)
    # x_ref  : (N, D)  f32 input node features
    # w_ref  : (3, D, D), al_ref/ar_ref/b_ref: (3, 1, D)  stacked per-layer params
    # out_ref: (N, D)  f32
    # Decode the edge mask once; cast to f32 first so the mask lives in the same
    # vreg layout as the f32 e-matrix (avoids int8-mask relayout).
    mask = adj_ref[...].astype(jnp.float32) > 0                         # (N, N)
    h = x_ref[...]                                                      # running features

    for l in range(NUM_LAYERS):                                         # static unroll (3)
        z = jnp.dot(h, w_ref[l], preferred_element_type=jnp.float32)    # (N, D)  MXU

        # Destination score as a column via VPU multiply + lane reduce.
        er = jnp.sum(z * ar_ref[l], axis=-1, keepdims=True)             # (N, 1)
        # Source score as a row via a tiny q@k^T-style contraction (no transpose,
        # no extra DMA'd transposed input).
        el = lax.dot_general(al_ref[l], z, (((1,), (1,)), ((), ())),
                             preferred_element_type=jnp.float32)        # (1, N)

        e = er + el                                                     # e[v,u] = er[v] + el[u]
        e = jnp.where(e > 0, e, NEG_SLOPE * e)                          # leaky_relu
        e = jnp.where(mask, e, jnp.float32(-1e30))                      # mask non-edges
        m = jnp.max(e, axis=-1, keepdims=True)                          # stable softmax
        p = jnp.where(mask, jnp.exp(e - m), 0.0)                        # keep DGL zero-in-degree rows -> 0
        denom = jnp.sum(p, axis=-1, keepdims=True)
        alpha = p * pl.reciprocal(jnp.maximum(denom, 1e-20), approx=True)   # EUP vrcp

        h = jnp.dot(alpha, z, preferred_element_type=jnp.float32)       # (N, D) aggregation
        h = jnp.maximum(h + b_ref[l], 0.0)                              # bias + relu

    out_ref[...] = h


def prepare_params(params):
    """One-time parameter glue (stacking) at load time, not per forward call."""
    ws = jnp.stack([w for (w, _, _, _) in params])                      # (3, D, D)
    als = jnp.stack([al for (_, al, _, _) in params])                   # (3, 1, D)
    ars = jnp.stack([ar for (_, _, ar, _) in params])                   # (3, 1, D)
    bs = jnp.stack([b.reshape(1, -1) for (_, _, _, b) in params])       # (3, 1, D)
    return ws, als, ars, bs


def hierarchical_layers_forward(adj_i8, f, stacked_params):
    """Equivalent of hierarchical_layers.forward(g, f): gat1 -> gat2 -> gat3 -> squeeze().
    With num_heads=1 the head dim of size 1 is implicit, so the result is already the
    squeezed (N, h_dim) tensor. Single fused pallas_call for all three layers."""
    ws, als, ars, bs = stacked_params
    N, d = f.shape
    return pl.pallas_call(
        fused_gat_kernel,
        out_shape=jax.ShapeDtypeStruct((N, d), jnp.float32),
        in_specs=[pl.BlockSpec(memory_space=pltpu.MemorySpace.VMEM)] * 6,
        out_specs=pl.BlockSpec(memory_space=pltpu.MemorySpace.VMEM),
    )(adj_i8, f, ws, als, ars, bs)


# ---------------- pure-JAX reference (for correctness check only) ----------------
def gat_layer_ref(x, adj, w, al, ar, b):
    z = x @ w
    el = (z * al).sum(-1)
    er = (z * ar).sum(-1)
    e = er[:, None] + el[None, :]
    e = jnp.where(e > 0, e, NEG_SLOPE * e)
    mask = adj > 0
    e = jnp.where(mask, e, -1e30)
    e = e - e.max(-1, keepdims=True)
    p = jnp.where(mask, jnp.exp(e), 0.0)
    alpha = p / jnp.maximum(p.sum(-1, keepdims=True), 1e-20)
    return jnp.maximum(alpha @ z + b, 0.0)


if __name__ == "__main__":
    key = jax.random.PRNGKey(0)
    # Stacking GATConv(in_dim, h_dim) three times in the PyTorch module only typechecks
    # when in_dim == h_dim, so we pick them equal.
    N, in_dim, h_dim = 8, 32, 32
    ks = jax.random.split(key, 16)

    f = jax.random.normal(ks[0], (N, in_dim), jnp.float32)

    # Random directed graph with self-loops; adj[dst, src]. Shipped to the kernel as int8.
    adj_f = (jax.random.uniform(ks[1], (N, N)) < 0.35).astype(jnp.float32)
    adj_f = jnp.maximum(adj_f, jnp.eye(N, dtype=jnp.float32))
    adj_i8 = adj_f.astype(jnp.int8)

    # Deterministic synthetic parameters for the 3 GAT layers
    # (fc weight (in,out), attn_l (1,out), attn_r (1,out), bias (out,)).
    params = []
    ki = 2
    for _ in range(3):
        w = jax.random.normal(ks[ki], (in_dim, h_dim), jnp.float32) / jnp.sqrt(in_dim); ki += 1
        al = jax.random.normal(ks[ki], (1, h_dim), jnp.float32) * 0.1; ki += 1
        ar = jax.random.normal(ks[ki], (1, h_dim), jnp.float32) * 0.1; ki += 1
        b = jax.random.normal(ks[ki], (h_dim,), jnp.float32) * 0.05; ki += 1
        params.append((w, al, ar, b))

    stacked = prepare_params(params)   # one-time glue

    out = hierarchical_layers_forward(adj_i8, f, stacked)
    out = jax.block_until_ready(out)
    assert out.shape == (N, h_dim)

    ref = f
    for (w, al, ar, b) in params:
        ref = gat_layer_ref(ref, adj_f, w, al, ar, b)
    # Tolerance relaxed slightly (2e-3) to account for the approx (EUP) reciprocal in
    # the softmax denominator; still well within meaningful agreement.
    assert jnp.allclose(out, ref, rtol=2e-3, atol=2e-3), "Pallas kernel mismatch vs reference"

    print("KERNEL_OK")
</pallas_src>

<mosaic_0001>
module attributes {stable_mosaic.version = 11 : i64} {
  func.func @fused_gat_kernel(%arg0: memref<8x8xi8, #tpu.memory_space<vmem>>, %arg1: memref<8x32xf32, #tpu.memory_space<vmem>>, %arg2: memref<3x32x32xf32, #tpu.memory_space<vmem>>, %arg3: memref<3x1x32xf32, #tpu.memory_space<vmem>>, %arg4: memref<3x1x32xf32, #tpu.memory_space<vmem>>, %arg5: memref<3x1x32xf32, #tpu.memory_space<vmem>>, %arg6: memref<8x32xf32, #tpu.memory_space<vmem>>) attributes {dimension_semantics = [], scalar_prefetch = 0 : i64, scratch_operands = 0 : i64, tpu.core_type = #tpu.core_type<tc>} {
    %c0 = arith.constant 0 : index
    %c0_0 = arith.constant 0 : index
    %0 = vector.load %arg0[%c0, %c0_0] : memref<8x8xi8, #tpu.memory_space<vmem>>, vector<8x8xi8>
    %1 = arith.sitofp %0 : vector<8x8xi8> to vector<8x8xf32>
    %cst = arith.constant 0.000000e+00 : f32
    %2 = vector.broadcast %cst : f32 to vector<8x8xf32>
    %3 = arith.cmpf ogt, %1, %2 : vector<8x8xf32>
    %c0_1 = arith.constant 0 : index
    %c0_2 = arith.constant 0 : index
    %4 = vector.load %arg1[%c0_1, %c0_2] : memref<8x32xf32, #tpu.memory_space<vmem>>, vector<8x32xf32>
    %c0_3 = arith.constant 0 : index
    %c0_4 = arith.constant 0 : index
    %c0_5 = arith.constant 0 : index
    %5 = vector.load %arg2[%c0_3, %c0_4, %c0_5] : memref<3x32x32xf32, #tpu.memory_space<vmem>>, vector<1x32x32xf32>
    %6 = vector.shape_cast %5 : vector<1x32x32xf32> to vector<32x32xf32>
    %cst_6 = arith.constant dense<0.000000e+00> : vector<8x32xf32>
    %7 = tpu.matmul %4, %6, %cst_6 {dimension_numbers = #tpu.dot_dimension_numbers<[1], [0], [0], [1], [0, 0, 1, 1], [], []>} : vector<8x32xf32>, vector<32x32xf32>, vector<8x32xf32> -> vector<8x32xf32>
    %c0_7 = arith.constant 0 : index
    %c0_8 = arith.constant 0 : index
    %c0_9 = arith.constant 0 : index
    %8 = vector.load %arg4[%c0_7, %c0_8, %c0_9] : memref<3x1x32xf32, #tpu.memory_space<vmem>>, vector<1x1x32xf32>
    %9 = vector.shape_cast %8 : vector<1x1x32xf32> to vector<1x32xf32>
    %10 = vector.broadcast %9 : vector<1x32xf32> to vector<8x32xf32>
    %11 = arith.mulf %7, %10 : vector<8x32xf32>
    %cst_10 = arith.constant dense<0.000000e+00> : vector<8xf32>
    %12 = vector.multi_reduction <add>, %11, %cst_10 [1] : vector<8x32xf32> to vector<8xf32>
    %13 = vector.shape_cast %12 : vector<8xf32> to vector<8x1xf32>
    %c0_11 = arith.constant 0 : index
    %c0_12 = arith.constant 0 : index
    %c0_13 = arith.constant 0 : index
    %14 = vector.load %arg3[%c0_11, %c0_12, %c0_13] : memref<3x1x32xf32, #tpu.memory_space<vmem>>, vector<1x1x32xf32>
    %15 = vector.shape_cast %14 : vector<1x1x32xf32> to vector<1x32xf32>
    %cst_14 = arith.constant dense<0.000000e+00> : vector<1x8xf32>
    %16 = tpu.matmul %15, %7, %cst_14 {dimension_numbers = #tpu.dot_dimension_numbers<[1], [1], [0], [0], [0, 0, 1, 0], [], []>} : vector<1x32xf32>, vector<8x32xf32>, vector<1x8xf32> -> vector<1x8xf32>
    %17 = vector.broadcast %13 : vector<8x1xf32> to vector<8x8xf32>
    %18 = vector.broadcast %16 : vector<1x8xf32> to vector<8x8xf32>
    %19 = arith.addf %17, %18 : vector<8x8xf32>
    %cst_15 = arith.constant 0.000000e+00 : f32
    %20 = vector.broadcast %cst_15 : f32 to vector<8x8xf32>
    %21 = arith.cmpf ogt, %19, %20 : vector<8x8xf32>
    %cst_16 = arith.constant 2.000000e-01 : f32
    %22 = vector.broadcast %cst_16 : f32 to vector<8x8xf32>
    %23 = arith.mulf %22, %19 : vector<8x8xf32>
    %24 = arith.select %21, %19, %23 : vector<8x8xi1>, vector<8x8xf32>
    %cst_17 = arith.constant -1.000000e+30 : f32
    %25 = vector.broadcast %cst_17 : f32 to vector<8x8xf32>
    %26 = arith.select %3, %24, %25 : vector<8x8xi1>, vector<8x8xf32>
    %cst_18 = arith.constant dense<0xFF800000> : vector<8xf32>
    %27 = vector.multi_reduction <maximumf>, %26, %cst_18 [1] : vector<8x8xf32> to vector<8xf32>
    %28 = vector.shape_cast %27 : vector<8xf32> to vector<8x1xf32>
    %29 = vector.broadcast %28 : vector<8x1xf32> to vector<8x8xf32>
    %30 = arith.subf %26, %29 : vector<8x8xf32>
    %31 = math.exp %30 : vector<8x8xf32>
    %cst_19 = arith.constant 0.000000e+00 : f32
    %32 = vector.broadcast %cst_19 : f32 to vector<8x8xf32>
    %33 = arith.select %3, %31, %32 : vector<8x8xi1>, vector<8x8xf32>
    %cst_20 = arith.constant dense<0.000000e+00> : vector<8xf32>
    %34 = vector.multi_reduction <add>, %33, %cst_20 [1] : vector<8x8xf32> to vector<8xf32>
    %35 = vector.shape_cast %34 : vector<8xf32> to vector<8x1xf32>
    %cst_21 = arith.constant 9.99999968E-21 : f32
    %36 = vector.broadcast %cst_21 : f32 to vector<8x1xf32>
    %37 = arith.maximumf %35, %36 : vector<8x1xf32>
    %38 = tpu.reciprocal %37 {approx = true} : vector<8x1xf32> -> vector<8x1xf32>
    %39 = vector.broadcast %38 : vector<8x1xf32> to vector<8x8xf32>
    %40 = arith.mulf %33, %39 : vector<8x8xf32>
    %cst_22 = arith.constant dense<0.000000e+00> : vector<8x32xf32>
    %41 = tpu.matmul %40, %7, %cst_22 {dimension_numbers = #tpu.dot_dimension_numbers<[1], [0], [0], [1], [0, 0, 1, 1], [], []>} : vector<8x8xf32>, vector<8x32xf32>, vector<8x32xf32> -> vector<8x32xf32>
    %c0_23 = arith.constant 0 : index
    %c0_24 = arith.constant 0 : index
    %c0_25 = arith.constant 0 : index
    %42 = vector.load %arg5[%c0_23, %c0_24, %c0_25] : memref<3x1x32xf32, #tpu.memory_space<vmem>>, vector<1x1x32xf32>
    %43 = vector.shape_cast %42 : vector<1x1x32xf32> to vector<1x32xf32>
    %44 = vector.broadcast %43 : vector<1x32xf32> to vector<8x32xf32>
    %45 = arith.addf %41, %44 : vector<8x32xf32>
    %cst_26 = arith.constant 0.000000e+00 : f32
    %46 = vector.broadcast %cst_26 : f32 to vector<8x32xf32>
    %47 = arith.maximumf %45, %46 : vector<8x32xf32>
    %c1 = arith.constant 1 : index
    %c0_27 = arith.constant 0 : index
    %c0_28 = arith.constant 0 : index
    %48 = vector.load %arg2[%c1, %c0_27, %c0_28] : memref<3x32x32xf32, #tpu.memory_space<vmem>>, vector<1x32x32xf32>
    %49 = vector.shape_cast %48 : vector<1x32x32xf32> to vector<32x32xf32>
    %cst_29 = arith.constant dense<0.000000e+00> : vector<8x32xf32>
    %50 = tpu.matmul %47, %49, %cst_29 {dimension_numbers = #tpu.dot_dimension_numbers<[1], [0], [0], [1], [0, 0, 1, 1], [], []>} : vector<8x32xf32>, vector<32x32xf32>, vector<8x32xf32> -> vector<8x32xf32>
    %c1_30 = arith.constant 1 : index
    %c0_31 = arith.constant 0 : index
    %c0_32 = arith.constant 0 : index
    %51 = vector.load %arg4[%c1_30, %c0_31, %c0_32] : memref<3x1x32xf32, #tpu.memory_space<vmem>>, vector<1x1x32xf32>
    %52 = vector.shape_cast %51 : vector<1x1x32xf32> to vector<1x32xf32>
    %53 = vector.broadcast %52 : vector<1x32xf32> to vector<8x32xf32>
    %54 = arith.mulf %50, %53 : vector<8x32xf32>
    %cst_33 = arith.constant dense<0.000000e+00> : vector<8xf32>
    %55 = vector.multi_reduction <add>, %54, %cst_33 [1] : vector<8x32xf32> to vector<8xf32>
    %56 = vector.shape_cast %55 : vector<8xf32> to vector<8x1xf32>
    %c1_34 = arith.constant 1 : index
    %c0_35 = arith.constant 0 : index
    %c0_36 = arith.constant 0 : index
    %57 = vector.load %arg3[%c1_34, %c0_35, %c0_36] : memref<3x1x32xf32, #tpu.memory_space<vmem>>, vector<1x1x32xf32>
    %58 = vector.shape_cast %57 : vector<1x1x32xf32> to vector<1x32xf32>
    %cst_37 = arith.constant dense<0.000000e+00> : vector<1x8xf32>
    %59 = tpu.matmul %58, %50, %cst_37 {dimension_numbers = #tpu.dot_dimension_numbers<[1], [1], [0], [0], [0, 0, 1, 0], [], []>} : vector<1x32xf32>, vector<8x32xf32>, vector<1x8xf32> -> vector<1x8xf32>
    %60 = vector.broadcast %56 : vector<8x1xf32> to vector<8x8xf32>
    %61 = vector.broadcast %59 : vector<1x8xf32> to vector<8x8xf32>
    %62 = arith.addf %60, %61 : vector<8x8xf32>
    %cst_38 = arith.constant 0.000000e+00 : f32
    %63 = vector.broadcast %cst_38 : f32 to vector<8x8xf32>
    %64 = arith.cmpf ogt, %62, %63 : vector<8x8xf32>
    %cst_39 = arith.constant 2.000000e-01 : f32
    %65 = vector.broadcast %cst_39 : f32 to vector<8x8xf32>
    %66 = arith.mulf %65, %62 : vector<8x8xf32>
    %67 = arith.select %64, %62, %66 : vector<8x8xi1>, vector<8x8xf32>
    %cst_40 = arith.constant -1.000000e+30 : f32
    %68 = vector.broadcast %cst_40 : f32 to vector<8x8xf32>
    %69 = arith.select %3, %67, %68 : vector<8x8xi1>, vector<8x8xf32>
    %cst_41 = arith.constant dense<0xFF800000> : vector<8xf32>
    %70 = vector.multi_reduction <maximumf>, %69, %cst_41 [1] : vector<8x8xf32> to vector<8xf32>
    %71 = vector.shape_cast %70 : vector<8xf32> to vector<8x1xf32>
    %72 = vector.broadcast %71 : vector<8x1xf32> to vector<8x8xf32>
    %73 = arith.subf %69, %72 : vector<8x8xf32>
    %74 = math.exp %73 : vector<8x8xf32>
    %cst_42 = arith.constant 0.000000e+00 : f32
    %75 = vector.broadcast %cst_42 : f32 to vector<8x8xf32>
    %76 = arith.select %3, %74, %75 : vector<8x8xi1>, vector<8x8xf32>
    %cst_43 = arith.constant dense<0.000000e+00> : vector<8xf32>
    %77 = vector.multi_reduction <add>, %76, %cst_43 [1] : vector<8x8xf32> to vector<8xf32>
    %78 = vector.shape_cast %77 : vector<8xf32> to vector<8x1xf32>
    %cst_44 = arith.constant 9.99999968E-21 : f32
    %79 = vector.broadcast %cst_44 : f32 to vector<8x1xf32>
    %80 = arith.maximumf %78, %79 : vector<8x1xf32>
    %81 = tpu.reciprocal %80 {approx = true} : vector<8x1xf32> -> vector<8x1xf32>
    %82 = vector.broadcast %81 : vector<8x1xf32> to vector<8x8xf32>
    %83 = arith.mulf %76, %82 : vector<8x8xf32>
    %cst_45 = arith.constant dense<0.000000e+00> : vector<8x32xf32>
    %84 = tpu.matmul %83, %50, %cst_45 {dimension_numbers = #tpu.dot_dimension_numbers<[1], [0], [0], [1], [0, 0, 1, 1], [], []>} : vector<8x8xf32>, vector<8x32xf32>, vector<8x32xf32> -> vector<8x32xf32>
    %c1_46 = arith.constant 1 : index
    %c0_47 = arith.constant 0 : index
    %c0_48 = arith.constant 0 : index
    %85 = vector.load %arg5[%c1_46, %c0_47, %c0_48] : memref<3x1x32xf32, #tpu.memory_space<vmem>>, vector<1x1x32xf32>
    %86 = vector.shape_cast %85 : vector<1x1x32xf32> to vector<1x32xf32>
    %87 = vector.broadcast %86 : vector<1x32xf32> to vector<8x32xf32>
    %88 = arith.addf %84, %87 : vector<8x32xf32>
    %cst_49 = arith.constant 0.000000e+00 : f32
    %89 = vector.broadcast %cst_49 : f32 to vector<8x32xf32>
    %90 = arith.maximumf %88, %89 : vector<8x32xf32>
    %c2 = arith.constant 2 : index
    %c0_50 = arith.constant 0 : index
    %c0_51 = arith.constant 0 : index
    %91 = vector.load %arg2[%c2, %c0_50, %c0_51] : memref<3x32x32xf32, #tpu.memory_space<vmem>>, vector<1x32x32xf32>
    %92 = vector.shape_cast %91 : vector<1x32x32xf32> to vector<32x32xf32>
    %cst_52 = arith.constant dense<0.000000e+00> : vector<8x32xf32>
    %93 = tpu.matmul %90, %92, %cst_52 {dimension_numbers = #tpu.dot_dimension_numbers<[1], [0], [0], [1], [0, 0, 1, 1], [], []>} : vector<8x32xf32>, vector<32x32xf32>, vector<8x32xf32> -> vector<8x32xf32>
    %c2_53 = arith.constant 2 : index
    %c0_54 = arith.constant 0 : index
    %c0_55 = arith.constant 0 : index
    %94 = vector.load %arg4[%c2_53, %c0_54, %c0_55] : memref<3x1x32xf32, #tpu.memory_space<vmem>>, vector<1x1x32xf32>
    %95 = vector.shape_cast %94 : vector<1x1x32xf32> to vector<1x32xf32>
    %96 = vector.broadcast %95 : vector<1x32xf32> to vector<8x32xf32>
    %97 = arith.mulf %93, %96 : vector<8x32xf32>
    %cst_56 = arith.constant dense<0.000000e+00> : vector<8xf32>
    %98 = vector.multi_reduction <add>, %97, %cst_56 [1] : vector<8x32xf32> to vector<8xf32>
    %99 = vector.shape_cast %98 : vector<8xf32> to vector<8x1xf32>
    %c2_57 = arith.constant 2 : index
    %c0_58 = arith.constant 0 : index
    %c0_59 = arith.constant 0 : index
    %100 = vector.load %arg3[%c2_57, %c0_58, %c0_59] : memref<3x1x32xf32, #tpu.memory_space<vmem>>, vector<1x1x32xf32>
    %101 = vector.shape_cast %100 : vector<1x1x32xf32> to vector<1x32xf32>
    %cst_60 = arith.constant dense<0.000000e+00> : vector<1x8xf32>
    %102 = tpu.matmul %101, %93, %cst_60 {dimension_numbers = #tpu.dot_dimension_numbers<[1], [1], [0], [0], [0, 0, 1, 0], [], []>} : vector<1x32xf32>, vector<8x32xf32>, vector<1x8xf32> -> vector<1x8xf32>
    %103 = vector.broadcast %99 : vector<8x1xf32> to vector<8x8xf32>
    %104 = vector.broadcast %102 : vector<1x8xf32> to vector<8x8xf32>
    %105 = arith.addf %103, %104 : vector<8x8xf32>
    %cst_61 = arith.constant 0.000000e+00 : f32
    %106 = vector.broadcast %cst_61 : f32 to vector<8x8xf32>
    %107 = arith.cmpf ogt, %105, %106 : vector<8x8xf32>
    %cst_62 = arith.constant 2.000000e-01 : f32
    %108 = vector.broadcast %cst_62 : f32 to vector<8x8xf32>
    %109 = arith.mulf %108, %105 : vector<8x8xf32>
    %110 = arith.select %107, %105, %109 : vector<8x8xi1>, vector<8x8xf32>
    %cst_63 = arith.constant -1.000000e+30 : f32
    %111 = vector.broadcast %cst_63 : f32 to vector<8x8xf32>
    %112 = arith.select %3, %110, %111 : vector<8x8xi1>, vector<8x8xf32>
    %cst_64 = arith.constant dense<0xFF800000> : vector<8xf32>
    %113 = vector.multi_reduction <maximumf>, %112, %cst_64 [1] : vector<8x8xf32> to vector<8xf32>
    %114 = vector.shape_cast %113 : vector<8xf32> to vector<8x1xf32>
    %115 = vector.broadcast %114 : vector<8x1xf32> to vector<8x8xf32>
    %116 = arith.subf %112, %115 : vector<8x8xf32>
    %117 = math.exp %116 : vector<8x8xf32>
    %cst_65 = arith.constant 0.000000e+00 : f32
    %118 = vector.broadcast %cst_65 : f32 to vector<8x8xf32>
    %119 = arith.select %3, %117, %118 : vector<8x8xi1>, vector<8x8xf32>
    %cst_66 = arith.constant dense<0.000000e+00> : vector<8xf32>
    %120 = vector.multi_reduction <add>, %119, %cst_66 [1] : vector<8x8xf32> to vector<8xf32>
    %121 = vector.shape_cast %120 : vector<8xf32> to vector<8x1xf32>
    %cst_67 = arith.constant 9.99999968E-21 : f32
    %122 = vector.broadcast %cst_67 : f32 to vector<8x1xf32>
    %123 = arith.maximumf %121, %122 : vector<8x1xf32>
    %124 = tpu.reciprocal %123 {approx = true} : vector<8x1xf32> -> vector<8x1xf32>
    %125 = vector.broadcast %124 : vector<8x1xf32> to vector<8x8xf32>
    %126 = arith.mulf %119, %125 : vector<8x8xf32>
    %cst_68 = arith.constant dense<0.000000e+00> : vector<8x32xf32>
    %127 = tpu.matmul %126, %93, %cst_68 {dimension_numbers = #tpu.dot_dimension_numbers<[1], [0], [0], [1], [0, 0, 1, 1], [], []>} : vector<8x8xf32>, vector<8x32xf32>, vector<8x32xf32> -> vector<8x32xf32>
    %c2_69 = arith.constant 2 : index
    %c0_70 = arith.constant 0 : index
    %c0_71 = arith.constant 0 : index
    %128 = vector.load %arg5[%c2_69, %c0_70, %c0_71] : memref<3x1x32xf32, #tpu.memory_space<vmem>>, vector<1x1x32xf32>
    %129 = vector.shape_cast %128 : vector<1x1x32xf32> to vector<1x32xf32>
    %130 = vector.broadcast %129 : vector<1x32xf32> to vector<8x32xf32>
    %131 = arith.addf %127, %130 : vector<8x32xf32>
    %cst_72 = arith.constant 0.000000e+00 : f32
    %132 = vector.broadcast %cst_72 : f32 to vector<8x32xf32>
    %133 = arith.maximumf %131, %132 : vector<8x32xf32>
    %c0_73 = arith.constant 0 : index
    %c0_74 = arith.constant 0 : index
    %134 = vector.load %arg6[%c0_73, %c0_74] : memref<8x32xf32, #tpu.memory_space<vmem>>, vector<8x32xf32>
    tpu.vector_store %arg6[%c0_73, %c0_74], %133 {strides = array<i32>} : memref<8x32xf32, #tpu.memory_space<vmem>>, vector<8x32xf32>,
    return
  }
}

</mosaic_0001>

<bundles_post_ra>
// kernel: tpu_custom_call.1
= control target key start
LH: loop header
LB: loop body
LE: loop exit
PB: predicated region body
PF: predicated region fallthrough
CT: control target
= control target key end

     0   :  { %11 = vsyncpa [#allocation3], 0  ;;  %s1335_s0 = inlined_call_operand.hbm [shape: s8[8,8], index: 0, kind: input, shape index: {}]   ;;  %s1336_s1 = inlined_call_operand.hbm [shape: f32[8,32], index: 1, kind: input, shape index: {}]   ;;  %s1337_s2 = inlined_call_operand.hbm [shape: f32[3,32,32], index: 2, kind: input, shape index: {}]   ;;  %s1338_s3 = inlined_call_operand.vmem [shape: f32[3,1,32], index: 3, kind: input, shape index: {}]   ;;  %s1339_s4 = inlined_call_operand.vmem [shape: f32[3,1,32], index: 4, kind: input, shape index: {}]   ;;  %s1340_s5 = inlined_call_operand.vmem [shape: f32[3,1,32], index: 5, kind: input, shape index: {}]   ;;  %s1341_s6 = inlined_call_operand.hbm [shape: f32[8,32], index: 6, kind: output, shape index: {}]  }
   0x1   :  { %12 = vsyncpa [#allocation6], 0 }
   0x2   :  { %13 = vsyncpa [#allocation4], 0  ;;  %s1144_s21 = smov [#allocation5]   ;;  %s1145_s23 = smov [#allocation2]  }
   0x3   :  { %s30_s22 = sshll.u32 %s1144_s21, 4  ;;  %s20_s24 = sshll.u32 %s1145_s23, 4  ;;  %s31_s22 = int_to_ptr.vmem [resolvable:$true] %s30_s22  ;;  %s21_s24 = int_to_ptr.vmem [resolvable:$true] %s20_s24 }
   0x4   :  { %s1050_s27 = scalar_lea.hbm %s1336_s1, 128 }
   0x5   :  { %p1051_p0 = scmp.ne.s32.totalorder %s1336_s1, %s1050_s27  ;;  %p1054_p1 = scmp.lt.u32.totalorder %s1050_s27, %s1336_s1 }
   0x7   :  { %p1056_p2 = pnand %p1054_p1, %p1051_p0 }
   0x9   :  { %1059 = shalt.err (!%p1056_p2)
}
   0xa   :  { %s1060_s8 = scalar_lea.vmem %s31_s22, 128  ;;  %p1065_p4 = scmp.lt.s32.totalorder %s31_s22, %s31_s22 }
   0xb   :  { %p1061_p3 = scmp.ne.s32.totalorder %s31_s22, %s1060_s8  ;;  %p1066_p5 = scmp.lt.s32.totalorder %s1060_s8, %s1060_s8 }
   0xd   :  { %p1067_p6 = por %p1066_p5, %p1065_p4 }
   0xf   :  { %p1068_p7 = pnand %p1067_p6, %p1061_p3 }
  0x11   :  { %1071 = shalt.err (!%p1068_p7)
}
  0x12   :  { %33 = dma.hbm_to_vmem [thread:$0]  %s1336_s1, 128, %s31_s22, [#allocation6]  }
  0x13   :  { %s1072_s13 = scalar_lea.hbm %s1335_s0, 32 }
  0x14   :  { %p1073_p8 = scmp.ne.s32.totalorder %s1335_s0, %s1072_s13  ;;  %p1076_p9 = scmp.lt.u32.totalorder %s1072_s13, %s1335_s0 }
  0x16   :  { %p1078_p10 = pnand %p1076_p9, %p1073_p8 }
  0x18   :  { %1081 = shalt.err (!%p1078_p10)
}
  0x19   :  { %s1082_s18 = scalar_lea.vmem %s21_s24, 32  ;;  %p1087_p12 = scmp.lt.s32.totalorder %s21_s24, %s21_s24 }
  0x1a   :  { %p1083_p11 = scmp.ne.s32.totalorder %s21_s24, %s1082_s18  ;;  %p1088_p13 = scmp.lt.s32.totalorder %s1082_s18, %s1082_s18 }
  0x1c   :  { %p1089_p0 = por %p1088_p13, %p1087_p12 }
  0x1e   :  { %p1090_p1 = pnand %p1089_p0, %p1083_p11 }
  0x20   :  { %1093 = shalt.err (!%p1090_p1)
}
  0x21   :  { %23 = dma.hbm_to_vmem [thread:$0]  %s1335_s0, 32, %s21_s24, [#allocation3]  }
  0x22   :  { %s1146_s20 = smov [#allocation7]   ;;  %s1094_s25 = scalar_lea.hbm %s1337_s2, 1536 }
  0x23   :  { %s39_s21 = sshll.u32 %s1146_s20, 4  ;;  %p1095_p2 = scmp.ne.s32.totalorder %s1337_s2, %s1094_s25  ;;  %s40_s21 = int_to_ptr.vmem [resolvable:$true] %s39_s21 }
  0x24   :  { %p1098_p3 = scmp.lt.u32.totalorder %s1094_s25, %s1337_s2 }
  0x26   :  { %p1100_p4 = pnand %p1098_p3, %p1095_p2 }
  0x28   :  { %1103 = shalt.err (!%p1100_p4)
}
  0x29   :  { %s1104_s30 = scalar_lea.vmem %s40_s21, 1536  ;;  %p1109_p6 = scmp.lt.s32.totalorder %s40_s21, %s40_s21 }
  0x2a   :  { %p1105_p5 = scmp.ne.s32.totalorder %s40_s21, %s1104_s30  ;;  %p1110_p7 = scmp.lt.s32.totalorder %s1104_s30, %s1104_s30 }
  0x2c   :  { %p1111_p8 = por %p1110_p7, %p1109_p6 }
  0x2e   :  { %p1112_p9 = pnand %p1111_p8, %p1105_p5 }
  0x30   :  { %1115 = shalt.err (!%p1112_p9)
}
  0x31   :  { %s1147_s0 = smov 128   ;;  %s1148_s24 = smov 8  }
  0x32   :  { %45 = dma.hbm_to_vmem [thread:$0]  %s1337_s2, 1536, %s40_s21, [#allocation6], %s1147_s0, %s1147_s0, %s1148_s24  }
  0x33   :  { %1138 = dma.done.wait [#allocation3], 32  }
  0x34   :  { %1139 = vsyncadd [#allocation3], 4294967264 }
  0x35   :  { %1140 = dma.done.wait [#allocation6], 1664  }
  0x36   :  { %1141 = vsyncadd [#allocation6], 4294965632  ;;  %v1149_v0 = vmov 0.0|0.0   ;;  %vm1150_vm0 = vmmov 0   ;;  %v1151_v1 = vmov 0.0   ;;  %v66_v2 = vld [vmem:[#allocation7] sm:$0xff]  ;;  %v232_v15 = vlaneseq }
  0x37   :  { %1011 = vmatprep.subr.bf16.mxu0 %v1149_v0  ;;  %956 = vmatprep.mubr.msk.f32.mxu0 %vm1150_vm0, %v1151_v1  ;;  %v67_v3 = vld [vmem:[#allocation7 + $0x8] sm:$0xff]  ;;  %v68_v4 = vld [vmem:[#allocation7 + $0x10] sm:$0xff]  ;;  %v69_v6 = vld [vmem:[#allocation7 + $0x18] sm:$0xff]  ;;  %vm70_vm1 = vcmask 261120   ;;  %vm241_vm4 = vcmask 64512   ;;  %s1152_s23 = smov [#allocation8]  }
  0x38   :  { %959 = vmatprep.subr.mxu1 %v1151_v1  ;;  %961 = vmatprep.mubr.msk.f32.mxu1 %vm1150_vm0, %v1151_v1  ;;  %v1012_v5 = vpack.c.bf16 %v67_v3, %v66_v2  ;;  %v1015_v7 = vpack.c.bf16 %v69_v6, %v68_v4  ;;  %v65_v8 = vld [vmem:[#allocation5] sm:$0xff]  ;;  %v233_v16 = vshrl.u32 %v232_v15, 7  ;;  %v61_v17 = vld [vmem:[#allocation2] sm:$0x3]  ;;  %v337_v36 = vld [vmem:[#allocation7 + $0x20] sm:$0xff]  ;;  %s887_s25 = sshll.u32 %s1152_s23, 4  ;;  %s888_s25 = int_to_ptr.vmem [resolvable:$true] %s887_s25 }
  0x39   :  { %v898_v9 = vld [vmem:[%s1339_s4] ss:$0 sm:$0xff]  ;;  %v62_v19 = vunpack.c.0.s8 %v61_v17  ;;  %v338_v37 = vld [vmem:[#allocation7 + $0x28] sm:$0xff]  ;;  %v339_v43 = vld [vmem:[#allocation7 + $0x30] sm:$0xff]  ;;  %s1116_s26 = scalar_lea.vmem %s888_s25, 128  ;;  %p1121_p11 = scmp.lt.s32.totalorder %s888_s25, %s888_s25 }
  0x3a   :  { %1013 = vmatpush3.bf16.msra.mxu0 %v1012_v5  ;;  %v155_v12 = vld [vmem:[%s1338_s3] sm:$0x1]  ;;  %v1248_v18 = vsub.s32 0, %v233_v16  ;;  %v1018_v38 = vpack.c.bf16 %v338_v37, %v337_v36  ;;  %v905_v51 = vld [vmem:[%s1339_s4 + $0x1] ss:$0 sm:$0xff]  ;;  %v611_v17 = vld [vmem:[#allocation7 + $0x50] sm:$0xff]  ;;  %p1117_p10 = scmp.ne.s32.totalorder %s888_s25, %s1116_s26  ;;  %p1122_p12 = scmp.lt.s32.totalorder %s1116_s26, %s1116_s26 }
  0x3b   :  { %1014 = vmatprep.subr.bf16.mxu0 %v1149_v0  ;;  %v1251_v23 = vcvt.s32.f32 %v62_v19  ;;  %v340_v44 = vld [vmem:[#allocation7 + $0x38] sm:$0xff] }
  0x3c   :  { %v1021_v45 = vpack.c.bf16 %v340_v44, %v339_v43  ;;  %v901_v46 = vld [vmem:[%s1340_s5] ss:$0 sm:$0xff]  ;;  %v906_v54 = vld [vmem:[%s1338_s3 + $0x1] sm:$0x1]  ;;  %p1123_p13 = por %p1122_p12, %p1121_p11 }
  0x3d   :  { %vm64_vm2 = vcmp.gt.f32.partialorder %v1251_v23, 0.0  ;;  %v612_v19 = vld [vmem:[#allocation7 + $0x58] sm:$0xff] }
  0x3e   :  { %1016 = vmatpush3.bf16.msra.mxu0 %v1015_v7  ;;  %p1124_p0 = pnand %p1123_p13, %p1117_p10 }
  0x3f   :  { %1017 = vmatprep.subr.bf16.mxu0 %v1149_v0 }
  0x41   :  { %957 = vmatmul.mubr.msk.f32.vlgmr.msra.gmra.mrb[0].mxu0 %vm70_vm1, %v65_v8 }
  0x42   :  { %977 = vmatprep.mubr.msk.f32.mxu0 %vm1150_vm0, %v1151_v1  ;;  %1019 = vmatpush3.bf16.msra.mxu0 %v1018_v38 }
  0x43   :  { %1020 = vmatprep.subr.bf16.mxu0 %v1149_v0 }
  0x46   :  { %1022 = vmatpush3.bf16.msra.mxu0 %v1021_v45 }
  0x47   :  { %1023 = vmatprep.subr.bf16.mxu0 %v1149_v0 }
 0x114   :  { %v140_v10 = vpop.f32.mrb[0].mxu0 }
 0x115   :  { %v958_v11 = vpop.f32.mrb[1].mxu0  ;;  %960 = vmatpush3.xpose.msk.msra.mxu1 %vm70_vm1, %v140_v10  ;;  %v151_v13 = vmul.f32 %v898_v9, %v140_v10 }
 0x116   :  { %964 = vmatprep.subr.mxu1 %v1151_v1  ;;  %v610_v11 = vld [vmem:[#allocation7 + $0x48] sm:$0xff] }
 0x117   :  { %v152_v14 = vsel %vm70_vm1, %v151_v13, 0.0 }
 0x118   :  { %962 = vmatmul.mubr.msk.f32.vlgmr.msra.gmra.mrb[0].mxu1 %vm70_vm1, %v155_v12  ;;  %153 = vadd.xlane.f32.xlu0 %v152_v14 }
 0x119   :  { %965 = vmatpush3.msra.mxu1 %v140_v10  ;;  %966 = vmatprep.mubr.msk.f32.mxu1 %vm1150_vm0, %v1151_v1  ;;  %v609_v10 = vld [vmem:[#allocation7 + $0x40] sm:$0xff] }
 0x11a   :  { %980 = vmatprep.subr.mxu1 %v1151_v1  ;;  %v1024_v12 = vpack.c.bf16 %v610_v11, %v609_v10 }
 0x1a5   :  { %v154_v24 = vpop.xlane.xlu0 %153 }
 0x1eb   :  { %v228_v20 = vpop.f32.mrb[0].mxu1 }
 0x1ec   :  { %v235_v21 = vrot.slane %v228_v20, %v1248_v18  ;;  %v963_v22 = vpop.f32.mrb[1].mxu1  ;;  %v1027_v20 = vpack.c.bf16 %v612_v19, %v611_v17 }
 0x1ee   :  { %v236_v25 = vadd.f32 %v235_v21, %v154_v24  ;;  %v910_v21 = vld [vmem:[%s1340_s5 + $0x1] ss:$0 sm:$0xff] }
 0x1f0   :  { %vm237_vm3 = vcmp.gt.f32.partialorder %v236_v25, 0.0  ;;  %v238_v26 = vmul.f32 0.2, %v236_v25 }
 0x1f2   :  { %v239_v27 = vsel %vm237_vm3, %v236_v25, %v238_v26  ;;  %v914_v26 = vld [vmem:[%s1339_s4 + $0x2] ss:$0 sm:$0xff] }
 0x1f3   :  { %v240_v28 = vsel %vm64_vm2, %v239_v27, -1e+30 }
 0x1f4   :  { %v242_v29 = vsel %vm241_vm4, %v240_v28, -inf }
 0x1f5   :  { %243 = vmax.xlane.f32.xlu0 %v242_v29  ;;  %v915_v29 = vld [vmem:[%s1338_s3 + $0x2] sm:$0x1] }
 0x282   :  { %v244_v30 = vpop.xlane.xlu0 %243 }
 0x283   :  { %v245_v31 = vsub.f32 %v240_v28, %v244_v30 }
 0x285   :  { %v246_v32 = vmul.f32 1.442695, %v245_v31 }
 0x287   :  { %1038 = vpow2.f32 %v246_v32 }
 0x291   :  { %v1039_v33 = vpop.eup %1038 }
 0x292   :  { %v248_v34 = vsel %vm64_vm2, %v1039_v33, 0.0 }
 0x293   :  { %v249_v35 = vsel %vm241_vm4, %v248_v34, 0.0 }
 0x294   :  { %250 = vadd.xlane.f32.xlu1 %v249_v35 }
 0x321   :  { %v251_v39 = vpop.xlane.xlu1 %250 }
 0x322   :  { %v252_v40 = vmax.f32 %v251_v39, 1e-20 }
 0x324   :  { %1040 = vrcp.f32 %v252_v40 }
 0x32e   :  { %v1041_v41 = vpop.eup %1040 }
 0x32f   :  { %v254_v42 = vmul.f32 %v1041_v41, %v248_v34 }
 0x331   :  { %967 = vmatmul.mubr.msk.f32.vlgmr.msra.gmra.mrb[2].mxu1 %vm241_vm4, %v254_v42 }
 0x332   :  { %982 = vmatprep.mubr.msk.f32.mxu1 %vm1150_vm0, %v1151_v1 }
 0x404   :  { %v331_v47 = vpop.f32.mrb[2].mxu1 }
 0x405   :  { %v332_v48 = vadd.f32 %v901_v46, %v331_v47  ;;  %v968_v49 = vpop.f32.mrb[3].mxu1 }
 0x406   :  { %v919_v49 = vld [vmem:[%s1340_s5 + $0x2] ss:$0 sm:$0xff] }
 0x407   :  { %v335_v50 = vmax.f32 %v332_v48, 0.0 }
 0x409   :  { %978 = vmatmul.mubr.msk.f32.vlgmr.msra.gmra.mrb[2].mxu0 %vm70_vm1, %v335_v50 }
 0x40a   :  { %998 = vmatprep.mubr.msk.f32.mxu0 %vm1150_vm0, %v1151_v1  ;;  %1025 = vmatpush3.bf16.msra.mxu0 %v1024_v12 }
 0x40b   :  { %1026 = vmatprep.subr.bf16.mxu0 %v1149_v0 }
 0x40e   :  { %1028 = vmatpush3.bf16.msra.mxu0 %v1027_v20 }
 0x4dc   :  { %v410_v52 = vpop.f32.mrb[2].mxu0 }
 0x4dd   :  { %v979_v53 = vpop.f32.mrb[3].mxu0  ;;  %981 = vmatpush3.xpose.msk.msra.mxu1 %vm70_vm1, %v410_v52  ;;  %v422_v55 = vmul.f32 %v905_v51, %v410_v52 }
 0x4de   :  { %985 = vmatprep.subr.mxu1 %v1151_v1 }
 0x4df   :  { %v423_v56 = vsel %vm70_vm1, %v422_v55, 0.0 }
 0x4e0   :  { %983 = vmatmul.mubr.msk.f32.vlgmr.msra.gmra.mrb[4].mxu1 %vm70_vm1, %v906_v54  ;;  %424 = vadd.xlane.f32.xlu1 %v423_v56 }
 0x4e1   :  { %986 = vmatpush3.msra.mxu1 %v410_v52  ;;  %987 = vmatprep.mubr.msk.f32.mxu1 %vm1150_vm0, %v1151_v1 }
 0x4e2   :  { %1001 = vmatprep.subr.mxu1 %v1151_v1 }
 0x56d   :  { %v425_v60 = vpop.xlane.xlu1 %424 }
 0x5b3   :  { %v500_v57 = vpop.f32.mrb[4].mxu1 }
 0x5b4   :  { %v507_v58 = vrot.slane %v500_v57, %v1248_v18  ;;  %v984_v59 = vpop.f32.mrb[5].mxu1 }
 0x5b6   :  { %v508_v61 = vadd.f32 %v507_v58, %v425_v60 }
 0x5b8   :  { %vm509_vm5 = vcmp.gt.f32.partialorder %v508_v61, 0.0  ;;  %v510_v62 = vmul.f32 0.2, %v508_v61 }
 0x5ba   :  { %v511_v63 = vsel %vm509_vm5, %v508_v61, %v510_v62 }
 0x5bb   :  { %v512_v2 = vsel %vm64_vm2, %v511_v63, -1e+30 }
 0x5bc   :  { %v513_v3 = vsel %vm241_vm4, %v512_v2, -inf }
 0x5bd   :  { %514 = vmax.xlane.f32.xlu0 %v513_v3 }
 0x64a   :  { %v515_v4 = vpop.xlane.xlu0 %514 }
 0x64b   :  { %v516_v5 = vsub.f32 %v512_v2, %v515_v4 }
 0x64d   :  { %v517_v6 = vmul.f32 1.442695, %v516_v5 }
 0x64f   :  { %1042 = vpow2.f32 %v517_v6 }
 0x659   :  { %v1043_v7 = vpop.eup %1042 }
 0x65a   :  { %v519_v8 = vsel %vm64_vm2, %v1043_v7, 0.0 }
 0x65b   :  { %v520_v9 = vsel %vm241_vm4, %v519_v8, 0.0 }
 0x65c   :  { %521 = vadd.xlane.f32.xlu1 %v520_v9 }
 0x6e9   :  { %v522_v13 = vpop.xlane.xlu1 %521 }
 0x6ea   :  { %v523_v14 = vmax.f32 %v522_v13, 1e-20 }
 0x6ec   :  { %1044 = vrcp.f32 %v523_v14 }
 0x6f6   :  { %v1045_v15 = vpop.eup %1044 }
 0x6f7   :  { %v525_v16 = vmul.f32 %v1045_v15, %v519_v8 }
 0x6f9   :  { %988 = vmatmul.mubr.msk.f32.vlgmr.msra.gmra.mrb[6].mxu1 %vm241_vm4, %v525_v16 }
 0x6fa   :  { %1003 = vmatprep.mubr.msk.f32.mxu1 %vm1150_vm0, %v1151_v1 }
 0x7cc   :  { %v603_v22 = vpop.f32.mrb[6].mxu1 }
 0x7cd   :  { %v604_v0 = vadd.f32 %v910_v21, %v603_v22  ;;  %v989_v24 = vpop.f32.mrb[7].mxu1 }
 0x7cf   :  { %v607_v25 = vmax.f32 %v604_v0, 0.0 }
 0x7d1   :  { %999 = vmatmul.mubr.msk.f32.vlgmr.msra.gmra.mrb[4].mxu0 %vm70_vm1, %v607_v25 }
 0x8a4   :  { %v682_v27 = vpop.f32.mrb[4].mxu0 }
 0x8a5   :  { %v1000_v28 = vpop.f32.mrb[5].mxu0  ;;  %1002 = vmatpush3.xpose.msk.msra.mxu1 %vm70_vm1, %v682_v27  ;;  %v694_v30 = vmul.f32 %v914_v26, %v682_v27 }
 0x8a6   :  { %1006 = vmatprep.subr.mxu1 %v1151_v1 }
 0x8a7   :  { %v695_v31 = vsel %vm70_vm1, %v694_v30, 0.0 }
 0x8a8   :  { %1004 = vmatmul.mubr.msk.f32.vlgmr.msra.gmra.mrb[8].mxu1 %vm70_vm1, %v915_v29  ;;  %696 = vadd.xlane.f32.xlu0 %v695_v31 }
 0x8a9   :  { %1007 = vmatpush3.msra.mxu1 %v682_v27  ;;  %1008 = vmatprep.mubr.msk.f32.mxu1 %vm1150_vm0, %v1151_v1 }
 0x935   :  { %v697_v35 = vpop.xlane.xlu0 %696 }
 0x97b   :  { %v772_v32 = vpop.f32.mrb[8].mxu1 }
 0x97c   :  { %v779_v33 = vrot.slane %v772_v32, %v1248_v18  ;;  %v1005_v34 = vpop.f32.mrb[9].mxu1 }
 0x97e   :  { %v780_v36 = vadd.f32 %v779_v33, %v697_v35 }
 0x980   :  { %vm781_vm6 = vcmp.gt.f32.partialorder %v780_v36, 0.0  ;;  %v782_v37 = vmul.f32 0.2, %v780_v36 }
 0x982   :  { %v783_v38 = vsel %vm781_vm6, %v780_v36, %v782_v37 }
 0x983   :  { %v784_v39 = vsel %vm64_vm2, %v783_v38, -1e+30 }
 0x984   :  { %v785_v40 = vsel %vm241_vm4, %v784_v39, -inf }
 0x985   :  { %786 = vmax.xlane.f32.xlu1 %v785_v40 }
 0xa12   :  { %v787_v41 = vpop.xlane.xlu1 %786 }
 0xa13   :  { %v788_v42 = vsub.f32 %v784_v39, %v787_v41 }
 0xa15   :  { %v789_v43 = vmul.f32 1.442695, %v788_v42 }
 0xa17   :  { %1046 = vpow2.f32 %v789_v43 }
 0xa21   :  { %v1047_v1 = vpop.eup %1046 }
 0xa22   :  { %v791_v18 = vsel %vm64_vm2, %v1047_v1, 0.0 }
 0xa23   :  { %v792_v44 = vsel %vm241_vm4, %v791_v18, 0.0 }
 0xa24   :  { %793 = vadd.xlane.f32.xlu0 %v792_v44 }
 0xab1   :  { %v794_v45 = vpop.xlane.xlu0 %793 }
 0xab2   :  { %v795_v46 = vmax.f32 %v794_v45, 1e-20 }
 0xab4   :  { %1048 = vrcp.f32 %v795_v46 }
 0xabe   :  { %v1049_v47 = vpop.eup %1048 }
 0xabf   :  { %v797_v48 = vmul.f32 %v1049_v47, %v791_v18 }
 0xac1   :  { %1009 = vmatmul.mubr.msk.f32.vlgmr.msra.gmra.mrb[10].mxu1 %vm241_vm4, %v797_v48 }
 0xb94   :  { %v875_v50 = vpop.f32.mrb[10].mxu1 }
 0xb95   :  { %v876_v51 = vadd.f32 %v919_v49, %v875_v50  ;;  %v1010_v23 = vpop.f32.mrb[11].mxu1 }
 0xb97   :  { %v879_v52 = vmax.f32 %v876_v51, 0.0 }
 0xb99   :  { %880 = vst.msk [vmem:[#allocation8] sm:$0xff] %vm70_vm1, %v879_v52 }
 0xb9a   :  { %1127 = shalt.err (!%p1124_p0)
}
 0xb9b   :  { %s1128_s5 = scalar_lea.hbm %s1341_s6, 128 }
 0xb9c   :  { %p1129_p1 = scmp.ne.s32.totalorder %s1341_s6, %s1128_s5  ;;  %p1132_p2 = scmp.lt.u32.totalorder %s1128_s5, %s1341_s6 }
 0xb9e   :  { %p1134_p3 = pnand %p1132_p2, %p1129_p1 }
 0xba0   :  { %1137 = shalt.err (!%p1134_p3)
}
 0xba1   :  { %890 = dma.vmem_to_hbm [thread:$0]  %s888_s25, 128, %s1341_s6, [#allocation4]  }
 0xba2   :  { %1142 = dma.done.wait [#allocation4], 128  }
 0xba3   :  { %1143 = vsyncadd [#allocation4], 4294967168 }
 0xba4   :  { %894 = vsyncpa [#allocation3], 1 }
 0xba5   :  { %895 = vsyncpa [#allocation6], 1 }
 0xba6   :  { %896 = vsyncpa [#allocation4], 1 }

</bundles_post_ra>
